<compile_context>
chip_gen: v7x
topology: tpu7x:2x2x1
jax: 0.10.0
libtpu: 0.0.40
codegen_flags: <defaults>
</compile_context>

<pallas_src>
import jax
import jax.numpy as jnp
from jax.experimental import pallas as pl
from jax.experimental.pallas import tpu as pltpu

LANES = 128
SUBLANES = 8
MAX_TILE_ROWS = 2048   # 1 MiB preds + 2 MiB targets per step, double-buffered.
NUM_SLICES = 2         # leading "parallel" grid axis (both TCs on v7x).


def _round_up(x, m):
    return ((x + m - 1) // m) * m


def _custom_mse_kernel(expand_ref, t_ref, tg_ref, o_ref):
    """Accumulate per-lane sums of (t_dup - tg)^2 into the resident (8, 256) output block."""
    k = pl.program_id(1)

    @pl.when(k == 0)
    def _():
        o_ref[...] = jnp.zeros_like(o_ref)

    t = t_ref[...]            # (TR, 128)  predictions
    tg = tg_ref[...]          # (TR, 256)  interleaved targets [r, m, r, m, ...]

    # Duplicate each prediction lane into an adjacent pair with a constant 0/1
    # MXU matmul: t_dup[:, 2j] = t_dup[:, 2j+1] = t[:, j].
    # Bit-exact because the matrix entries are 0/1 and the f32 MXU dot uses an
    # exact hi/lo split -- keep preferred_element_type pinned to float32.
    t_dup = jnp.dot(t, expand_ref[...], preferred_element_type=jnp.float32)

    d = t_dup - tg
    dd = d * d                # even lanes: (t - r)^2, odd lanes: (t - m)^2

    tr = dd.shape[0]
    # Major-axis (layout-free) reshape + sum over axis 0: pure VPU vreg adds.
    # Keeps the accumulator at 2 vregs; no full-tile acc load/store traffic.
    o_ref[...] += dd.reshape(tr // SUBLANES, SUBLANES, 2 * LANES).sum(axis=0)


def custom_mse_loss(predictions, targets, gamma=0.65,
                    max_tile_rows=MAX_TILE_ROWS, num_slices=NUM_SLICES):
    """Pallas TPU implementation of CustomMSELoss.forward.

    predictions: (N,) float32
    targets:     (N, 2) float32 (column 0 = r, column 1 = m)
    returns scalar float32 loss = mean((t - r)^2 - gamma * (t - m)^2)
    """
    n = predictions.shape[0]
    assert targets.shape == (n, 2)

    preds = predictions.astype(jnp.float32)
    tgts = targets.astype(jnp.float32)

    rows = pl.cdiv(n, LANES)
    per_slice = pl.cdiv(rows, num_slices)
    tile_rows = min(max_tile_rows, _round_up(per_slice, SUBLANES))
    k_steps = pl.cdiv(per_slice, tile_rows)
    rows_pad = num_slices * k_steps * tile_rows
    n_pad = rows_pad * LANES

    if n_pad != n:
        # Zero padding contributes (0-0)^2 - gamma*(0-0)^2 = 0 to the sum.
        preds = jnp.pad(preds, (0, n_pad - n))
        tgts = jnp.pad(tgts, ((0, n_pad - n), (0, 0)))

    # Free contiguous reshapes (no HBM gather): lane-dense slabs.
    t2 = preds.reshape(rows_pad, LANES)            # (rows_pad, 128)
    tg2 = tgts.reshape(rows_pad, 2 * LANES)        # (rows_pad, 256) interleaved

    # Constant lane-duplication matrix: expand[j, 2j] = expand[j, 2j+1] = 1.
    expand = (jnp.arange(2 * LANES, dtype=jnp.int32)[None, :] // 2
              == jnp.arange(LANES, dtype=jnp.int32)[:, None]).astype(jnp.float32)

    partials = pl.pallas_call(
        _custom_mse_kernel,
        out_shape=jax.ShapeDtypeStruct((num_slices * SUBLANES, 2 * LANES),
                                       jnp.float32),
        grid_spec=pltpu.PrefetchScalarGridSpec(
            num_scalar_prefetch=0,
            grid=(num_slices, k_steps),
            in_specs=[
                # Constant block index -> fetched once, VMEM-resident.
                pl.BlockSpec((LANES, 2 * LANES), lambda p, k: (0, 0)),
                pl.BlockSpec((tile_rows, LANES),
                             lambda p, k: (p * k_steps + k, 0)),
                pl.BlockSpec((tile_rows, 2 * LANES),
                             lambda p, k: (p * k_steps + k, 0)),
            ],
            # Same block index across k -> output stays VMEM-resident and acts
            # as the per-slice accumulator (init/finalize gated on k).
            out_specs=pl.BlockSpec((SUBLANES, 2 * LANES), lambda p, k: (p, 0)),
        ),
        compiler_params=pltpu.CompilerParams(
            dimension_semantics=("parallel", "arbitrary")),
    )(expand, t2, tg2)

    # Apply the per-lane weights (+1 on r lanes, -gamma on m lanes) and finish
    # the mean on the tiny (num_slices*8, 256) partial-sum array in plain XLA.
    w = jnp.where(jnp.arange(2 * LANES) % 2 == 0,
                  jnp.float32(1.0), jnp.float32(-gamma))
    return jnp.sum(partials * w[None, :]) / jnp.float32(n)


def custom_mse_loss_ref(predictions, targets, gamma=0.65):
    r = targets[:, 0]
    m = targets[:, 1]
    t = predictions
    return jnp.mean((t - r) ** 2 - gamma * (t - m) ** 2)


if __name__ == "__main__":
    key = jax.random.PRNGKey(0)
    k1, k2 = jax.random.split(key)

    # Small, lane-aligned case.
    N = 2048
    predictions = jax.random.normal(k1, (N,), dtype=jnp.float32)
    targets = jax.random.normal(k2, (N, 2), dtype=jnp.float32)

    loss = custom_mse_loss(predictions, targets, gamma=0.65)
    loss = jax.block_until_ready(loss)
    ref = custom_mse_loss_ref(predictions, targets, gamma=0.65)
    assert jnp.allclose(loss, ref, rtol=1e-4, atol=1e-5), (loss, ref)

    # Ragged case (exercises the zero-padding path).
    N2 = 1000
    k3, k4 = jax.random.split(k2)
    predictions2 = jax.random.normal(k3, (N2,), dtype=jnp.float32)
    targets2 = jax.random.normal(k4, (N2, 2), dtype=jnp.float32)

    loss2 = custom_mse_loss(predictions2, targets2, gamma=0.65)
    loss2 = jax.block_until_ready(loss2)
    ref2 = custom_mse_loss_ref(predictions2, targets2, gamma=0.65)
    assert jnp.allclose(loss2, ref2, rtol=1e-4, atol=1e-5), (loss2, ref2)

    # Multi-step reduction case (small tiles -> k_steps > 1 accumulation path).
    N3 = 16384
    k5, k6 = jax.random.split(k4)
    predictions3 = jax.random.normal(k5, (N3,), dtype=jnp.float32)
    targets3 = jax.random.normal(k6, (N3, 2), dtype=jnp.float32)

    loss3 = custom_mse_loss(predictions3, targets3, gamma=0.65, max_tile_rows=16)
    loss3 = jax.block_until_ready(loss3)
    ref3 = custom_mse_loss_ref(predictions3, targets3, gamma=0.65)
    assert jnp.allclose(loss3, ref3, rtol=1e-4, atol=1e-5), (loss3, ref3)

    print("KERNEL_OK")
</pallas_src>

<mosaic_0001>
module attributes {stable_mosaic.version = 11 : i64} {
  func.func @_custom_mse_kernel(%arg0: i32, %arg1: i32, %arg2: memref<128x256xf32, #tpu.memory_space<vmem>>, %arg3: memref<8x128xf32, #tpu.memory_space<vmem>>, %arg4: memref<8x256xf32, #tpu.memory_space<vmem>>, %arg5: memref<8x256xf32, #tpu.memory_space<vmem>>) attributes {dimension_semantics = [#tpu.dimension_semantics<parallel>, #tpu.dimension_semantics<arbitrary>], iteration_bounds = array<i64: 2, 1>, scalar_prefetch = 0 : i64, scratch_operands = 0 : i64, tpu.core_type = #tpu.core_type<tc>, window_params = [{pipeline_mode = #tpu.pipeline_mode<synchronous>, transform_indices = @transform_0, window_bounds = array<i64: 128, 256>}, {transform_indices = @transform_1, window_bounds = array<i64: 8, 128>}, {transform_indices = @transform_2, window_bounds = array<i64: 8, 256>}, {transform_indices = @transform_3, window_bounds = array<i64: 8, 256>}]} {
    %c0_i32 = arith.constant 0 : i32
    %0 = arith.cmpi eq, %arg1, %c0_i32 : i32
    %1 = arith.extui %0 : i1 to i32
    %c0_i32_0 = arith.constant 0 : i32
    %2 = arith.cmpi ne, %1, %c0_i32_0 : i32
    scf.if %2 {
      %cst_11 = arith.constant 0.000000e+00 : f32
      %14 = vector.broadcast %cst_11 : f32 to vector<8x256xf32>
      %c0_12 = arith.constant 0 : index
      %c0_13 = arith.constant 0 : index
      %15 = vector.load %arg5[%c0_12, %c0_13] : memref<8x256xf32, #tpu.memory_space<vmem>>, vector<8x256xf32>
      tpu.vector_store %arg5[%c0_12, %c0_13], %14 {strides = array<i32>} : memref<8x256xf32, #tpu.memory_space<vmem>>, vector<8x256xf32>,
    } else {
    }
    %c0 = arith.constant 0 : index
    %c0_1 = arith.constant 0 : index
    %3 = vector.load %arg3[%c0, %c0_1] : memref<8x128xf32, #tpu.memory_space<vmem>>, vector<8x128xf32>
    %c0_2 = arith.constant 0 : index
    %c0_3 = arith.constant 0 : index
    %4 = vector.load %arg4[%c0_2, %c0_3] : memref<8x256xf32, #tpu.memory_space<vmem>>, vector<8x256xf32>
    %c0_4 = arith.constant 0 : index
    %c0_5 = arith.constant 0 : index
    %5 = vector.load %arg2[%c0_4, %c0_5] : memref<128x256xf32, #tpu.memory_space<vmem>>, vector<128x256xf32>
    %cst = arith.constant dense<0.000000e+00> : vector<8x256xf32>
    %6 = tpu.matmul %3, %5, %cst {dimension_numbers = #tpu.dot_dimension_numbers<[1], [0], [0], [1], [0, 0, 1, 1], [], []>} : vector<8x128xf32>, vector<128x256xf32>, vector<8x256xf32> -> vector<8x256xf32>
    %7 = arith.subf %6, %4 : vector<8x256xf32>
    %8 = arith.mulf %7, %7 : vector<8x256xf32>
    %c0_6 = arith.constant 0 : index
    %c0_7 = arith.constant 0 : index
    %9 = vector.load %arg5[%c0_6, %c0_7] : memref<8x256xf32, #tpu.memory_space<vmem>>, vector<8x256xf32>
    %10 = vector.shape_cast %8 : vector<8x256xf32> to vector<1x8x256xf32>
    %cst_8 = arith.constant dense<0.000000e+00> : vector<8x256xf32>
    %11 = vector.multi_reduction <add>, %10, %cst_8 [0] : vector<1x8x256xf32> to vector<8x256xf32>
    %12 = arith.addf %9, %11 : vector<8x256xf32>
    %c0_9 = arith.constant 0 : index
    %c0_10 = arith.constant 0 : index
    %13 = vector.load %arg5[%c0_9, %c0_10] : memref<8x256xf32, #tpu.memory_space<vmem>>, vector<8x256xf32>
    tpu.vector_store %arg5[%c0_9, %c0_10], %12 {strides = array<i32>} : memref<8x256xf32, #tpu.memory_space<vmem>>, vector<8x256xf32>,
    return
  }
  func.func @transform_0(%arg0: i32, %arg1: i32) -> (i32, i32) {
    %c0_i32 = arith.constant 0 : i32
    %c0_i32_0 = arith.constant 0 : i32
    %c0_i32_1 = arith.constant 0 : i32
    return %c0_i32, %c0_i32_0 : i32, i32
  }
  func.func @transform_1(%arg0: i32, %arg1: i32) -> (i32, i32) {
    %c1_i32 = arith.constant 1 : i32
    %0 = arith.muli %arg0, %c1_i32 : i32
    %1 = arith.addi %0, %arg1 : i32
    %c0_i32 = arith.constant 0 : i32
    %c0_i32_0 = arith.constant 0 : i32
    return %1, %c0_i32 : i32, i32
  }
  func.func @transform_2(%arg0: i32, %arg1: i32) -> (i32, i32) {
    %c1_i32 = arith.constant 1 : i32
    %0 = arith.muli %arg0, %c1_i32 : i32
    %1 = arith.addi %0, %arg1 : i32
    %c0_i32 = arith.constant 0 : i32
    %c0_i32_0 = arith.constant 0 : i32
    return %1, %c0_i32 : i32, i32
  }
  func.func @transform_3(%arg0: i32, %arg1: i32) -> (i32, i32) {
    %c0_i32 = arith.constant 0 : i32
    %c0_i32_0 = arith.constant 0 : i32
    return %arg0, %c0_i32 : i32, i32
  }
}

</mosaic_0001>

<bundles_post_ra>
// kernel: tpu_custom_call.1
= control target key start
LH: loop header
LB: loop body
LE: loop exit
PB: predicated region body
PF: predicated region fallthrough
CT: control target
= control target key end

     0   :  { %s1104_s0 = inlined_call_operand.hbm [shape: f32[128,256], index: 0, kind: input, shape index: {}]   ;;  %s1105_s1 = inlined_call_operand.hbm [shape: f32[16,128], index: 1, kind: input, shape index: {}]   ;;  %s1106_s2 = inlined_call_operand.hbm [shape: f32[16,256], index: 2, kind: input, shape index: {}]   ;;  %s1107_s3 = inlined_call_operand.hbm [shape: f32[16,256], index: 3, kind: output, shape index: {}]  }
   0x1   :  { %1116 = sst [smem:[#allocation13_spill]] %s1105_s1 }
   0x2   :  { %8 = vsyncpa [#allocation3], 0 }
   0x3   :  { %9 = vsyncpa [#allocation6], 0 }
   0x4   :  { %11 = vsyncpa [#allocation6 + $0x1], 0 }
   0x5   :  { %12 = vsyncpa [#allocation4], 0 }
   0x6   :  { %14 = vsyncpa [#allocation4 + $0x1], 0  ;;  %s845_s12 = smov 0   ;;  %s847_s13 = smov 0  }
   0x7   :  { %s849_s14 = smov 0   ;;  %s851_s15 = smov 0  }
   0x8   :  { %s853_s16 = smov 0   ;;  %s855_s17 = smov 0  }
   0x9 LB: > { %s32_s18 = sadd.s32 1, %s812_s16  ;;  %s62_s19 = sadd.s32 1, %s804_s14  ;;  %s816_s17 = sphi %s855_s17, %s20_s17   ;;  %s812_s16 = sphi %s853_s16, %s1140_s16   ;;  %s808_s15 = sphi %s851_s15, %s1139_s15   ;;  %s804_s14 = sphi %s849_s14, %s1138_s14   ;;  %s800_s13 = sphi %s847_s13, %s1137_s13   ;;  %s796_s12 = sphi %s845_s12, %s1136_s12  }
   0xa   : > { %p34_p0 = scmp.ge.s32.totalorder %s32_s18, 2  ;;  %p69_p1 = scmp.ne.s32.totalorder %s804_s14, %s800_s13 }
   0xb   : > { %p70_p2 = scmp.eq.s32.totalorder %s816_s17, 0  ;;  %p587_p5 = scmp.lt.s32.totalorder %s816_s17, 2 }
   0xc   : > { %s1142_s18 = smov (%p34_p0, %s32_s18), 0  ;;  %s166_s21 = sand.u32 1, %s816_s17  }
   0xd   : > { %1117 = sst [smem:[#allocation12_spill]] %s1142_s18  ;;  %p71_p4 = por %p70_p2, %p69_p1 }
   0xe   : > { %s59_s20 = ssub.s32 %s812_s16, %s1142_s18  ;;  %s168_s22 = sand.u32 1, %s804_s14  }
   0xf   : > { %p60_p6 = scmp.eq.s32.totalorder %s59_s20, 0  ;;  %s513_s23 = sshll.u32 %s812_s16, 7 }
  0x10   : > { %s512_s25 = sshll.u32 %s168_s22, 3  ;;  %s1118_s1 = sld [smem:[#allocation13_spill]] }
  0x11   : > { %s893_s24 = scalar_select %p60_p6, %s804_s14, %s62_s19  }
  0x12   : > { %p902_p7 = pnand %p587_p5, %p71_p4  ;;  %s170_s30 = scalar_lea.vmem [#allocation5], %s512_s25 }
  0x13   : > { %s178_s4 = sshll.u32 %s170_s30, 4  ;;  %s908_s5 = scalar_lea.sflag [#allocation6], %s166_s21  ;;  %s906_s4 = int_to_ptr.vmem [resolvable:$true] %s178_s4 }
  0x14   : > { %s1119_s29 = scalar_select %p902_p7, 1, 0 }
  0x15   : > { %p1110_p9 = pneg %p902_p7 }
  0x16   : > { %s900_s28 = scalar_lea.hbm %s1118_s1, %s513_s23  ;;  %s647_s9 = scalar_lea.hbm %s1118_s1, 256 }
  0x17   : > { %s642_s6 = scalar_lea.hbm %s900_s28, 128  ;;  %p648_p12 = scmp.lt.u32.totalorder %s900_s28, %s1118_s1 }
  0x18   : > { %p643_p8 = scmp.ne.s32.totalorder %s900_s28, %s642_s6  ;;  %p649_p13 = scmp.lt.u32.totalorder %s647_s9, %s642_s6 }
  0x19   : > { %p651_p2 = scmp.lt.u32.totalorder %s642_s6, %s900_s28 }
  0x1a   : > { %p645_p10 = pnand %p1110_p9, %p643_p8  ;;  %p650_p0 = por %p649_p13, %p648_p12 }
  0x1c   : > { %p646_p11 = pneg %p645_p10  ;;  %p652_p4 = por %p651_p2, %p650_p0 }
  0x1e   : > { %p653_p5 = pnand %p652_p4, %p646_p11 }
  0x20   : > { %656 = shalt.err (!%p653_p5)
}
  0x21   : > { %s657_s19 = scalar_lea.vmem %s906_s4, 128  ;;  %s818_s20 = smov [#allocation5]  }
  0x22   : > { %p658_p6 = scmp.ne.s32.totalorder %s906_s4, %s657_s19  ;;  %s662_s21 = sshll.u32 %s818_s20, 4  ;;  %s663_s21 = int_to_ptr.vmem [resolvable:$false] %s662_s21 }
  0x23   : > { %s664_s23 = scalar_lea.vmem %s663_s21, 256  ;;  %p665_p3 = scmp.lt.s32.totalorder %s906_s4, %s663_s21 }
  0x24   : > { %p660_p8 = pnand %p658_p6, %p1110_p9  ;;  %p666_p12 = scmp.lt.s32.totalorder %s664_s23, %s657_s19 }
  0x26   : > { %p661_p10 = pneg %p660_p8  ;;  %p667_p13 = por %p666_p12, %p665_p3 }
  0x28   : > { %p668_p0 = pnand %p667_p13, %p661_p10 }
  0x2a   : > { %671 = shalt.err (!%p668_p0)
}
  0x2b   : > { %578 = dma.hbm_to_vmem [thread:$0]  (!%p902_p7), %s900_s28, 128, %s906_s4, %s908_s5  }
  0x2c   : > { %s937_s25 = sadd.s32 4294967295, %s816_s17   ;;  %s508_s26 = sadd.s32 4294967294, %s816_s17  }
  0x2d   : > { %p75_p3 = scmp.ne.s32.totalorder %s800_s13, %s796_s12  ;;  %p1109_p11 = scmp.eq.s32.totalorder %s937_s25, 0 }
  0x2e   : > { %p127_p2 = scmp.eq.s32.totalorder %s937_s25, 1  ;;  %p133_p4 = scmp.eq.s32.totalorder %s508_s26, 1 }
  0x2f   : > { %p946_p5 = por %p1109_p11, %p75_p3  ;;  %p509_p6 = scmp.ge.s32.totalorder %s816_s17, 1 }
  0x30   : > { %p954_p8 = por %p127_p2, %p69_p1  ;;  %p958_p10 = por %p133_p4, %p75_p3 }
  0x31   : > { %s1120_s27 = scalar_select %p946_p5, 1, 0 }
  0x32   : > { %s1121_s28 = scalar_select %p954_p8, 1, 0 }
  0x33   : > { %s1122_s30 = scalar_select %p958_p10, 1, 0 }
  0x34   : > { %p140_p12 = scmp.lt.s32.totalorder %s816_s17, 3  ;;  %s514_s4 = sshll.u32 %s168_s22, 4 }
  0x35   : > { %s819_s7 = smov [#allocation2]   ;;  %s527_s9 = sshll.u32 %s812_s16, 8 }
  0x36   : > { %p965_p13 = pnand %p509_p6, %p140_p12  ;;  %s152_s8 = sshll.u32 %s819_s7, 4  ;;  %s969_s8 = int_to_ptr.vmem [resolvable:$true] %s152_s8 }
  0x37   : > { %s189_s10 = scalar_lea.vmem [#allocation7], %s514_s4  ;;  %s983_s21 = scalar_lea.hbm %s1106_s2, %s527_s9 }
  0x38   : > { %s1123_s6 = scalar_select %p965_p13, 1, 0 }
  0x39   : > { %p571_p1 = pneg %p965_p13  ;;  %s198_s11 = sshll.u32 %s189_s10, 4  ;;  %s985_s11 = int_to_ptr.vmem [resolvable:$true] %s198_s11 }
  0x3a   : > { %s672_s7 = scalar_lea.hbm %s1104_s0, 4096 }
  0x3b   : > { %p976_p0 = pnand %p571_p1, %p1109_p11  ;;  %p673_p3 = scmp.ne.s32.totalorder %s1104_s0, %s672_s7 }
  0x3c   : > { %p679_p12 = scmp.lt.u32.totalorder %s672_s7, %s1104_s0 }
  0x3d   : > { %p674_p2 = pneg %p976_p0 }
  0x3f   : > { %p675_p4 = pnand %p674_p2, %p673_p3 }
  0x41   : > { %p676_p6 = pneg %p675_p4 }
  0x43   : > { %p681_p1 = pnand %p679_p12, %p676_p6 }
  0x45   : > { %684 = shalt.err (!%p681_p1)
}
  0x46   : > { %s685_s9 = scalar_lea.vmem %s969_s8, 4096  ;;  %p693_p8 = scmp.lt.s32.totalorder %s969_s8, %s969_s8 }
  0x47   : > { %p686_p11 = scmp.ne.s32.totalorder %s969_s8, %s685_s9  ;;  %p694_p5 = scmp.lt.s32.totalorder %s685_s9, %s685_s9 }
  0x49   : > { %p688_p9 = pnand %p686_p11, %p674_p2  ;;  %p695_p13 = por %p694_p5, %p693_p8 }
  0x4b   : > { %p689_p10 = pneg %p688_p9 }
  0x4d   : > { %p696_p7 = pnand %p695_p13, %p689_p10 }
  0x4f   : > { %699 = shalt.err (!%p696_p7)
}
  0x50   : > { %s820_s1 = smov 256   ;;  %s821_s18 = smov 16  }
  0x51   : > { %574 = dma.hbm_to_vmem [thread:$0]  (!%p976_p0), %s1104_s0, 4096, %s969_s8, [#allocation3], %s820_s1, %s820_s1, %s821_s18  }
  0x52   : > { %s700_s23 = scalar_lea.hbm %s983_s21, 256  ;;  %p1125_p11 = scmp.ne.s32.totalorder %s1119_s29, 0 }
  0x53   : > { %p701_p9 = scmp.ne.s32.totalorder %s983_s21, %s700_s23  ;;  %s705_s4 = scalar_lea.hbm %s1106_s2, 512 }
  0x54   : > { %p1126_p5 = pneg %p1125_p11  ;;  %p706_p10 = scmp.lt.u32.totalorder %s983_s21, %s1106_s2 }
  0x55   : > { %p707_p13 = scmp.lt.u32.totalorder %s705_s4, %s700_s23  ;;  %p709_p2 = scmp.lt.u32.totalorder %s700_s23, %s983_s21 }
  0x56   : > { %p703_p8 = pnand %p701_p9, %p1126_p5 }
  0x57   : > { %p708_p3 = por %p707_p13, %p706_p10 }
  0x58   : > { %p704_p7 = pneg %p703_p8 }
  0x59   : > { %p710_p4 = por %p709_p2, %p708_p3 }
  0x5b   : > { %p711_p6 = pnand %p710_p4, %p704_p7 }
  0x5d   : > { %714 = shalt.err (!%p711_p6)
}
  0x5e   : > { %s715_s8 = scalar_lea.vmem %s985_s11, 256  ;;  %p1127_p12 = pmov %p1126_p5 }
  0x5f   : > { %p716_p0 = scmp.ne.s32.totalorder %s985_s11, %s715_s8  ;;  %s822_s19 = smov [#allocation7]  }
  0x60   : > { %s720_s1 = sshll.u32 %s822_s19, 4  ;;  %s721_s1 = int_to_ptr.vmem [resolvable:$false] %s720_s1 }
  0x61   : > { %p718_p1 = pnand %p716_p0, %p1127_p12  ;;  %s722_s18 = scalar_lea.vmem %s721_s1, 512 }
  0x62   : > { %p723_p5 = scmp.lt.s32.totalorder %s985_s11, %s721_s1  ;;  %p724_p8 = scmp.lt.s32.totalorder %s722_s18, %s715_s8 }
  0x63   : > { %p719_p9 = pneg %p718_p1 }
  0x64   : > { %p725_p10 = por %p724_p8, %p723_p5 }
  0x66   : > { %p726_p13 = pnand %p725_p10, %p719_p9 }
  0x68   : > { %729 = shalt.err (!%p726_p13)
}
  0x69   : > { %581 = dma.hbm_to_vmem [thread:$0]  (!%p1125_p11), %s983_s21, 256, %s985_s11, %s908_s5  }
  0x6a   : > { %p1128_p7 = scmp.ne.s32.totalorder %s1123_s6, 0 }
  0x6b   : > { %p1129_p3 = scmp.eq.s32.totalorder (!%p1128_p7), %s937_s25, 0 }
  0x6c   : > { %207 = sbr.rel (%p1128_p7) target bundleno = 387 (0x183), region = 32 }
  0x73   : > { %783 = dma.done.wait (%p1129_p3), [#allocation3], 4096   ;;  %p1130_p2 = pmov %p1129_p3 }
  0x74   : > { %s213_s22 = sand.u32 1, %s937_s25   ;;  %s1040_s20 = sand.u32 1, %s800_s13  }
  0x75   : > { %785 = vsyncadd (%p1130_p2), [#allocation3], 4294963200  ;;  %s519_s29 = sshll.u32 %s1040_s20, 3  ;;  %s214_s23 = scalar_lea.sflag [#allocation6], %s213_s22 }
  0x76   : > { %s1043_s26 = scalar_lea.vmem [#allocation5], %s519_s29  ;;  %p1131_p11 = scmp.ne.s32.totalorder %s1120_s27, 0 }
  0x78   : > { %787 = dma.done.wait (%p1131_p11), %s214_s23, 384  }
  0x79   : > { %789 = vsyncadd (%p1131_p11), %s214_s23, 4294966912  ;;  %v823_v0 = vmov 0.0   ;;  %v266_v1 = vld [vmem:[#allocation2 + $0x8] sm:$0xff]  ;;  %v268_v2 = vld [vmem:[#allocation2 + $0x18] sm:$0xff]  ;;  %s520_s5 = sshll.u32 %s1040_s20, 4  ;;  %s528_s27 = sshll.u32 %s808_s15, 8 }
  0x7a   : > { %361 = vmatprep.mubr.f32.mxu0 %v823_v0  ;;  %v265_v3 = vld [vmem:[#allocation2] sm:$0xff]  ;;  %v529_v4 = vpack.c.bf16 %v268_v2, %v266_v1  ;;  %v267_v5 = vld [vmem:[#allocation2 + $0x10] sm:$0xff]  ;;  %v270_v6 = vld [vmem:[#allocation2 + $0x28] sm:$0xff]  ;;  %s226_s25 = scalar_lea.vmem [#allocation7], %s520_s5  ;;  %s253_s6 = scalar_lea.vmem [#allocation8], %s520_s5 }
  0x7b   : > { %v272_v7 = vld [vmem:[#allocation2 + $0x38] sm:$0xff]  ;;  %v531_v8 = vpack.c.bf16 %v267_v5, %v265_v3  ;;  %v269_v10 = vld [vmem:[#allocation2 + $0x20] sm:$0xff]  ;;  %v271_v11 = vld [vmem:[#allocation2 + $0x30] sm:$0xff]  ;;  %s395_s11 = sshll.u32 %s253_s6, 4  ;;  %s1055_s4 = scalar_lea.hbm %s1107_s3, %s528_s27  ;;  %s1057_s11 = int_to_ptr.vmem [resolvable:$true] %s395_s11 }
  0x7c   : > { %v533_v9 = vpack.c.bf16 %v272_v7, %v270_v6  ;;  %v274_v12 = vld [vmem:[#allocation2 + $0x48] sm:$0xff]  ;;  %530 = vmatprep.subr.bf16.mxu0 %v529_v4  ;;  %v276_v13 = vld [vmem:[#allocation2 + $0x58] sm:$0xff]  ;;  %v535_v14 = vpack.c.bf16 %v271_v11, %v269_v10  ;;  %v273_v16 = vld [vmem:[#allocation2 + $0x40] sm:$0xff]  ;;  %s381_s10 = scalar_lea.sflag [#allocation4], %s1040_s20  ;;  %s730_s9 = scalar_lea.vmem %s1057_s11, 256 }
  0x7d   : > { %532 = vmatpush1.bf16.msra.mxu0 %v531_v8  ;;  %v537_v15 = vpack.c.bf16 %v276_v13, %v274_v12  ;;  %v275_v17 = vld [vmem:[#allocation2 + $0x50] sm:$0xff]  ;;  %v278_v18 = vld [vmem:[#allocation2 + $0x68] sm:$0xff]  ;;  %v280_v19 = vld [vmem:[#allocation2 + $0x78] sm:$0xff]  ;;  %p731_p4 = scmp.ne.s32.totalorder %s1057_s11, %s730_s9  ;;  %p1132_p6 = scmp.ne.s32.totalorder %s1121_s28, 0 }
  0x7e   : > { %534 = vmatprep.subr.bf16.mxu0 %v533_v9  ;;  %v539_v20 = vpack.c.bf16 %v275_v17, %v273_v16  ;;  %v541_v21 = vpack.c.bf16 %v280_v19, %v278_v18  ;;  %v277_v22 = vld [vmem:[#allocation2 + $0x60] sm:$0xff]  ;;  %v279_v23 = vld [vmem:[#allocation2 + $0x70] sm:$0xff]  ;;  %v282_v24 = vld [vmem:[#allocation2 + $0x88] sm:$0xff]  ;;  %s824_s15 = smov [#allocation8]  }
  0x7f   : > { %v284_v25 = vld [vmem:[#allocation2 + $0x98] sm:$0xff]  ;;  %v543_v26 = vpack.c.bf16 %v279_v23, %v277_v22  ;;  %v281_v28 = vld [vmem:[#allocation2 + $0x80] sm:$0xff]  ;;  %v283_v29 = vld [vmem:[#allocation2 + $0x90] sm:$0xff]  ;;  %p732_p0 = pnand %p731_p4, %p1132_p6  ;;  %s734_s8 = sshll.u32 %s824_s15, 4  ;;  %s735_s8 = int_to_ptr.vmem [resolvable:$false] %s734_s8 }
  0x80   : > { %v545_v27 = vpack.c.bf16 %v284_v25, %v282_v24  ;;  %v286_v30 = vld [vmem:[#allocation2 + $0xa8] sm:$0xff]  ;;  %v288_v31 = vld [vmem:[#allocation2 + $0xb8] sm:$0xff]  ;;  %v547_v32 = vpack.c.bf16 %v283_v29, %v281_v28  ;;  %v285_v34 = vld [vmem:[#allocation2 + $0xa0] sm:$0xff]  ;;  %s736_s19 = scalar_lea.vmem %s735_s8, 512  ;;  %p737_p1 = scmp.lt.s32.totalorder %s1057_s11, %s735_s8 }
  0x81   : > { %536 = vmatpush1.bf16.msra.mxu0 %v535_v14  ;;  %v549_v33 = vpack.c.bf16 %v288_v31, %v286_v30  ;;  %v287_v35 = vld [vmem:[#allocation2 + $0xb0] sm:$0xff]  ;;  %v290_v36 = vld [vmem:[#allocation2 + $0xc8] sm:$0xff]  ;;  %v292_v37 = vld [vmem:[#allocation2 + $0xd8] sm:$0xff]  ;;  %p733_p12 = pneg %p732_p0  ;;  %p738_p9 = scmp.lt.s32.totalorder %s736_s19, %s730_s9 }
  0x82   : > { %538 = vmatprep.subr.bf16.mxu0 %v537_v15  ;;  %v551_v38 = vpack.c.bf16 %v287_v35, %v285_v34  ;;  %v553_v39 = vpack.c.bf16 %v292_v37, %v290_v36  ;;  %v289_v40 = vld [vmem:[#allocation2 + $0xc0] sm:$0xff]  ;;  %v291_v41 = vld [vmem:[#allocation2 + $0xd0] sm:$0xff]  ;;  %v294_v42 = vld [vmem:[#allocation2 + $0xe8] sm:$0xff] }
  0x83   : > { %v296_v43 = vld [vmem:[#allocation2 + $0xf8] sm:$0xff]  ;;  %v555_v44 = vpack.c.bf16 %v291_v41, %v289_v40  ;;  %v293_v46 = vld [vmem:[#allocation2 + $0xe0] sm:$0xff]  ;;  %v295_v47 = vld [vmem:[#allocation2 + $0xf0] sm:$0xff]  ;;  %p739_p5 = por %p738_p9, %p737_p1 }
  0x84   : > { %v557_v45 = vpack.c.bf16 %v296_v43, %v294_v42  ;;  %v559_v48 = vpack.c.bf16 %v295_v47, %v293_v46  ;;  %v262_v49 = vld [vmem:[%s1043_s26] sm:$0xff]  ;;  %v263_v50 = vld [vmem:[%s226_s25] sm:$0xff] }
  0x85   : > { %540 = vmatpush1.bf16.msra.mxu0 %v539_v20  ;;  %v264_v51 = vld [vmem:[%s226_s25 + $0x8] sm:$0xff]  ;;  %p740_p8 = pnand %p739_p5, %p733_p12 }
  0x86   : > { %542 = vmatprep.subr.bf16.mxu0 %v541_v21 }
  0x89   : > { %544 = vmatpush1.bf16.msra.mxu0 %v543_v26 }
  0x8a   : > { %546 = vmatprep.subr.bf16.mxu0 %v545_v27 }
  0x8d   : > { %548 = vmatpush1.bf16.msra.mxu0 %v547_v32 }
  0x8e   : > { %550 = vmatprep.subr.bf16.mxu0 %v549_v33 }
  0x91   : > { %552 = vmatpush1.bf16.msra.mxu0 %v551_v38 }
  0x92   : > { %554 = vmatprep.subr.bf16.mxu0 %v553_v39 }
  0x95   : > { %556 = vmatpush1.bf16.msra.mxu0 %v555_v44 }
  0x96   : > { %558 = vmatprep.subr.bf16.mxu0 %v557_v45 }
  0x99   : > { %560 = vmatpush1.bf16.msra.mxu0 %v559_v48 }
  0x9c   : > { %362 = vmatmul.mubr.f32.vlgmr.msra.gmra.mrb[0].mxu0 %v262_v49 }
 0x16f   : > { %v363_v52 = vpop.f32.mrb[0].mxu0 }
 0x170   : > { %v368_v53 = vsub.f32 %v363_v52, %v263_v50  ;;  %v365_v54 = vpop.f32.mrb[1].mxu0 }
 0x171   : > { %v369_v55 = vsub.f32 %v365_v54, %v264_v51 }
 0x172   : > { %v370_v56 = vmul.f32 %v368_v53, %v368_v53 }
 0x173   : > { %v371_v57 = vmul.f32 %v369_v55, %v369_v55 }
 0x174   : > { %378 = vst [vmem:[%s253_s6] sm:$0xff] %v370_v56 }
 0x175   : > { %379 = vst [vmem:[%s253_s6 + $0x8] sm:$0xff] %v371_v57 }
 0x176   : > { %743 = shalt.err (!%p740_p8)
}
 0x177   : > { %s744_s1 = scalar_lea.hbm %s1055_s4, 256  ;;  %s748_s20 = scalar_lea.hbm %s1107_s3, 512 }
 0x178   : > { %p745_p10 = scmp.ne.s32.totalorder %s1055_s4, %s744_s1  ;;  %p749_p3 = scmp.lt.u32.totalorder %s1055_s4, %s1107_s3 }
 0x179   : > { %p750_p2 = scmp.lt.u32.totalorder %s748_s20, %s744_s1  ;;  %p752_p4 = scmp.lt.u32.totalorder %s744_s1, %s1055_s4 }
 0x17a   : > { %p746_p13 = pnand %p745_p10, %p1132_p6 }
 0x17b   : > { %p751_p11 = por %p750_p2, %p749_p3 }
 0x17c   : > { %p747_p7 = pneg %p746_p13 }
 0x17d   : > { %p753_p0 = por %p752_p4, %p751_p11 }
 0x17f   : > { %p754_p12 = pnand %p753_p0, %p747_p7 }
 0x181   : > { %757 = shalt.err (!%p754_p12)
}
 0x182   : > { %569 = dma.vmem_to_hbm [thread:$0]  (%p1132_p6), %s1057_s11, 256, %s1055_s4, %s381_s10  }
 0x183 PF: > { %s407_s26 = sand.u32 1, %s796_s12   ;;  %p1133_p1 = scmp.ne.s32.totalorder %s1122_s30, 0 }
 0x184   : > { %p1134_p9 = scmp.ge.s32.totalorder %s816_s17, 2  ;;  %s408_s5 = scalar_lea.sflag [#allocation4], %s407_s26 }
 0x186   : > { %p583_p5 = pnand %p1134_p9, %p1133_p1 }
 0x188   : > { %791 = dma.done.wait (!%p583_p5), %s408_s5, 256  }
 0x189   : > { %793 = vsyncadd (!%p583_p5), %s408_s5, 4294967040  ;;  %s20_s17 = sadd.s32 1, %s816_s17   ;;  %s1135_s28 = sld [smem:[#allocation12_spill]] }
 0x18a   : > { %p17_p8 = scmp.ge.s32.totalorder %s20_s17, 4   ;;  %s1136_s12 = smov %s800_s13 }
 0x18b   : > { %s1137_s13 = smov %s804_s14  ;;  %s1138_s14 = smov %s893_s24 }
 0x18c   : > { %s1139_s15 = smov %s812_s16  ;;  %19 = sbr.rel (!%p17_p8) target bundleno = 9 (0x9), region = 97 }
 0x18f   : > { %s1140_s16 = smov %s1135_s28 }
 0x193   :  { %413 = vsyncpa [#allocation3], 1 }
 0x194   :  { %415 = vsyncpa [#allocation3 + $0x1], 1 }
 0x195   :  { %416 = vsyncpa [#allocation6], 1 }
 0x196   :  { %418 = vsyncpa [#allocation6 + $0x1], 1 }
 0x197   :  { %419 = vsyncpa [#allocation4], 1 }
 0x198   :  { %421 = vsyncpa [#allocation4 + $0x1], 1 }

</bundles_post_ra>
